<compile_context>
chip_gen: v7x
topology: tpu7x:2x2x1
jax: 0.10.0
libtpu: 0.0.40
codegen_flags: <defaults>
</compile_context>

<pallas_src>
import jax
import jax.numpy as jnp
import numpy as np
from jax.experimental import pallas as pl
from jax.experimental.pallas import tpu as pltpu

_LANE = 128


def _mlp_kernel(x_ref, wv_ref, bv_ref, wp_ref, bp_ref, o_ref):
    """y = tanh((x @ Wv + bv) @ Wp + bp) for one (tm, Dp) row tile.

    x / Wv / Wp are bf16 (fast MXU path); biases and accumulation are f32.
    """
    x = x_ref[...]                                                     # (tm, Dp) bf16
    v = jnp.dot(x, wv_ref[...], preferred_element_type=jnp.float32) + bv_ref[...]
    vb = v.astype(jnp.bfloat16)
    y = jnp.tanh(jnp.dot(vb, wp_ref[...], preferred_element_type=jnp.float32)
                 + bp_ref[...])
    o_ref[...] = y.astype(o_ref.dtype)


def _round_up(x, m):
    return ((x + m - 1) // m) * m


def _pick_row_tile(M, row_tile):
    """Sublane-aligned row tile.  If M would collapse to one full-extent block
    but is big enough, split into >=2 (>=4 for big M) steps so both v7x
    TensorCores get work under dimension_semantics=("parallel",)."""
    row_tile = max(8, (row_tile // 8) * 8)
    if M <= row_tile:
        if M >= 1024:
            steps = 4
        elif M >= 256:
            steps = 2
        else:
            return M                      # tiny: single full-extent block
        return min(M, max(8, _round_up(pl.cdiv(M, steps), 8)))
    return row_tile


def _pad2(a, rows, cols):
    pr, pc = rows - a.shape[0], cols - a.shape[1]
    if pr == 0 and pc == 0:
        return a
    return jnp.pad(a, ((0, pr), (0, pc)))


def model_forward(x, x_mask, params, *, row_tile=512):
    """Pallas forward pass.  x: (B, S, D) f32; x_mask ignored (dead in the ref)."""
    del x_mask  # dead code in the reference forward
    B, S, D = x.shape
    M = B * S
    wq, bq, wk, bk, wv, bv, wa, ba, wp, bp = params
    del wq, bq, wk, bk, wa, ba  # dead parameters (see module docstring)

    # Lane-dense layout: pad the feature dim to a multiple of 128 so every
    # store is a full-lane vst (big lever for D < 128; no-op when D % 128 == 0).
    # Padded weight rows/cols and bias lanes are zero, so padded output lanes
    # are exactly tanh(0) = 0 and are sliced off below.
    Dp = _round_up(D, _LANE)

    x2 = _pad2(x.reshape(M, D).astype(jnp.bfloat16), M, Dp)
    wv_p = _pad2(wv.astype(jnp.bfloat16), Dp, Dp)
    wp_p = _pad2(wp.astype(jnp.bfloat16), Dp, Dp)
    bv_p = _pad2(bv, 1, Dp)
    bp_p = _pad2(bp, 1, Dp)

    tm = _pick_row_tile(M, row_tile)
    grid = (pl.cdiv(M, tm),)

    # Resident operands: constant index_map + single buffer (nothing to
    # prefetch, so Buffered(1) halves their VMEM cost with no perf loss).
    resident = lambda shape: pl.BlockSpec(shape, lambda i: (0, 0),
                                          pipeline_mode=pl.Buffered(1))

    # VMEM budget: bf16 weights (1 buf each) + f32 biases + double-buffered
    # bf16 x tiles and f32 out tiles, plus headroom; clamped to a value that is
    # safe on every chip generation (v7x has 64 MiB physical VMEM).
    vmem_need = (2 * Dp * Dp * 2 + 2 * Dp * 4
                 + 2 * tm * Dp * 2 + 2 * tm * Dp * 4 + (4 << 20))
    vmem_limit = int(min(max(vmem_need, 32 << 20), 64 << 20))

    cost = pl.CostEstimate(
        flops=4 * M * Dp * Dp,                       # two (M,Dp)x(Dp,Dp) matmuls
        transcendentals=M * Dp,                      # tanh
        bytes_accessed=M * Dp * (2 + 4) + 2 * Dp * Dp * 2 + 2 * Dp * 4,
    )

    out2 = pl.pallas_call(
        _mlp_kernel,
        out_shape=jax.ShapeDtypeStruct((M, Dp), jnp.float32),
        grid_spec=pltpu.PrefetchScalarGridSpec(
            num_scalar_prefetch=0,
            grid=grid,
            in_specs=[
                pl.BlockSpec((tm, Dp), lambda i: (i, 0)),   # x rows (streamed)
                resident((Dp, Dp)),                         # Wv (bf16, resident)
                resident((1, Dp)),                          # bv (f32)
                resident((Dp, Dp)),                         # Wp (bf16, resident)
                resident((1, Dp)),                          # bp (f32)
            ],
            out_specs=pl.BlockSpec((tm, Dp), lambda i: (i, 0)),
        ),
        compiler_params=pltpu.CompilerParams(
            dimension_semantics=("parallel",),
            vmem_limit_bytes=vmem_limit),
        cost_estimate=cost,
    )(x2, wv_p, bv_p, wp_p, bp_p)

    # TODO(synk): for large D (once 2*Dp^2*2B nears ~1/4 of VMEM) add a column
    # grid axis over Wp / the output and keep the (tm, Dp) intermediate v in a
    # VMEM scratch; unnecessary at these sizes.
    return out2[:, :D].reshape(B, S, D)


def reference_full(x, params):
    """Pure-JAX mirror of the full original dataflow (incl. the dead path).

    Requires S == D (the attn_net Linear(D,1) acts on the size-S score axis).
    Used to prove the in-kernel dead-code elimination is numerically exact.
    """
    wq, bq, wk, bk, wv, bv, wa, ba, wp, bp = params
    D = x.shape[-1]
    scaling = float(D) ** (-0.5)
    q = x @ wq + bq
    k = x @ wk + bk
    v = x @ wv + bv
    scores = jnp.einsum("bsd,btd->bst", q, k)
    lr = jnp.where(scores > 0, scores, 0.1 * scores)
    a = jnp.sum(lr * wa, axis=-1, keepdims=True) + ba[0, 0]
    w = jax.nn.softmax(scaling * a, axis=-1)      # size-1 axis -> exactly 1.0
    out = w * v
    return jnp.tanh(out @ wp + bp)


def reference_reduced(x, params):
    """Reduced (dead-code-eliminated) f32 reference: tanh((x@Wv+bv)@Wp+bp)."""
    _, _, _, _, wv, bv, _, _, wp, bp = params
    return jnp.tanh((x @ wv + bv) @ wp + bp)


def reference_reduced_bf16(x, params):
    """Reduced reference with the kernel's dtype plan (bf16 in, f32 accumulate)."""
    _, _, _, _, wv, bv, _, _, wp, bp = params
    v = jnp.dot(x.astype(jnp.bfloat16), wv.astype(jnp.bfloat16),
                preferred_element_type=jnp.float32) + bv
    return jnp.tanh(jnp.dot(v.astype(jnp.bfloat16), wp.astype(jnp.bfloat16),
                            preferred_element_type=jnp.float32) + bp)


def init_params(key, D):
    ks = jax.random.split(key, 10)
    scale = 0.1
    wq = scale * jax.random.normal(ks[0], (D, D), jnp.float32)
    bq = scale * jax.random.normal(ks[1], (1, D), jnp.float32)
    wk = scale * jax.random.normal(ks[2], (D, D), jnp.float32)
    bk = scale * jax.random.normal(ks[3], (1, D), jnp.float32)
    wv = scale * jax.random.normal(ks[4], (D, D), jnp.float32)
    bv = scale * jax.random.normal(ks[5], (1, D), jnp.float32)
    wa = scale * jax.random.normal(ks[6], (1, D), jnp.float32)   # attn_net weight
    ba = scale * jax.random.normal(ks[7], (1, 1), jnp.float32)   # attn_net bias
    wp = scale * jax.random.normal(ks[8], (D, D), jnp.float32)
    bp = scale * jax.random.normal(ks[9], (1, D), jnp.float32)
    return (wq, bq, wk, bk, wv, bv, wa, ba, wp, bp)


if __name__ == "__main__":
    key = jax.random.PRNGKey(0)
    kx, kp, kx2, kp2 = jax.random.split(key, 4)

    # Case 1: S == D so the FULL reference (with the dead attention path)
    # composes; the kernel (dead path removed, bf16 MXU inputs, lane padding)
    # must match the bf16 mirror tightly and the f32 references to bf16 accuracy.
    B, S, D = 3, 16, 16
    x = jax.random.normal(kx, (B, S, D), jnp.float32)
    # x_mask mirrors the torch example (first two positions 1, rest -1); unused.
    x_mask = jnp.concatenate(
        [jnp.ones((1, 2), jnp.int32), -jnp.ones((1, S - 2), jnp.int32)], axis=1)
    params = init_params(kp, D)

    y = jax.block_until_ready(model_forward(x, x_mask, params))
    np.testing.assert_allclose(np.asarray(y),
                               np.asarray(reference_reduced_bf16(x, params)),
                               rtol=1e-4, atol=1e-4)
    np.testing.assert_allclose(np.asarray(y),
                               np.asarray(reference_full(x, params)),
                               rtol=3e-2, atol=3e-2)
    np.testing.assert_allclose(np.asarray(y),
                               np.asarray(reference_reduced(x, params)),
                               rtol=3e-2, atol=3e-2)

    # Case 2: S != D (constraint relaxed after dead-code removal) and a small
    # row tile so the grid has >1 step (exercises single-buffered resident
    # weights while x/out row tiles stream).
    B2, S2, D2 = 2, 8, 32
    x_b = jax.random.normal(kx2, (B2, S2, D2), jnp.float32)
    params2 = init_params(kp2, D2)
    y2 = jax.block_until_ready(model_forward(x_b, None, params2, row_tile=8))
    np.testing.assert_allclose(np.asarray(y2),
                               np.asarray(reference_reduced_bf16(x_b, params2)),
                               rtol=1e-4, atol=1e-4)
    np.testing.assert_allclose(np.asarray(y2),
                               np.asarray(reference_reduced(x_b, params2)),
                               rtol=3e-2, atol=3e-2)

    print("KERNEL_OK")
</pallas_src>

<mosaic_0001>
module attributes {stable_mosaic.version = 11 : i64} {
  func.func @_mlp_kernel(%arg0: i32, %arg1: memref<48x128xbf16, #tpu.memory_space<vmem>>, %arg2: memref<128x128xbf16, #tpu.memory_space<vmem>>, %arg3: memref<1x128xf32, #tpu.memory_space<vmem>>, %arg4: memref<128x128xbf16, #tpu.memory_space<vmem>>, %arg5: memref<1x128xf32, #tpu.memory_space<vmem>>, %arg6: memref<48x128xf32, #tpu.memory_space<vmem>>) attributes {dimension_semantics = [#tpu.dimension_semantics<parallel>], iteration_bounds = array<i64: 1>, scalar_prefetch = 0 : i64, scratch_operands = 0 : i64, tpu.core_type = #tpu.core_type<tc>, window_params = [{transform_indices = @transform_0, window_bounds = array<i64: 48, 128>}, {pipeline_mode = #tpu.pipeline_mode<synchronous>, transform_indices = @transform_1, window_bounds = array<i64: 128, 128>}, {pipeline_mode = #tpu.pipeline_mode<synchronous>, transform_indices = @transform_2, window_bounds = array<i64: 1, 128>}, {pipeline_mode = #tpu.pipeline_mode<synchronous>, transform_indices = @transform_3, window_bounds = array<i64: 128, 128>}, {pipeline_mode = #tpu.pipeline_mode<synchronous>, transform_indices = @transform_4, window_bounds = array<i64: 1, 128>}, {transform_indices = @transform_5, window_bounds = array<i64: 48, 128>}]} {
    %c0 = arith.constant 0 : index
    %c0_0 = arith.constant 0 : index
    %0 = vector.load %arg1[%c0, %c0_0] : memref<48x128xbf16, #tpu.memory_space<vmem>>, vector<48x128xbf16>
    %c0_1 = arith.constant 0 : index
    %c0_2 = arith.constant 0 : index
    %1 = vector.load %arg2[%c0_1, %c0_2] : memref<128x128xbf16, #tpu.memory_space<vmem>>, vector<128x128xbf16>
    %cst = arith.constant dense<0.000000e+00> : vector<48x128xf32>
    %2 = tpu.matmul %0, %1, %cst {dimension_numbers = #tpu.dot_dimension_numbers<[1], [0], [0], [1], [0, 0, 1, 1], [], []>} : vector<48x128xbf16>, vector<128x128xbf16>, vector<48x128xf32> -> vector<48x128xf32>
    %c0_3 = arith.constant 0 : index
    %c0_4 = arith.constant 0 : index
    %3 = vector.load %arg3[%c0_3, %c0_4] : memref<1x128xf32, #tpu.memory_space<vmem>>, vector<1x128xf32>
    %4 = vector.broadcast %3 : vector<1x128xf32> to vector<48x128xf32>
    %5 = arith.addf %2, %4 : vector<48x128xf32>
    %6 = arith.truncf %5 : vector<48x128xf32> to vector<48x128xbf16>
    %c0_5 = arith.constant 0 : index
    %c0_6 = arith.constant 0 : index
    %7 = vector.load %arg4[%c0_5, %c0_6] : memref<128x128xbf16, #tpu.memory_space<vmem>>, vector<128x128xbf16>
    %cst_7 = arith.constant dense<0.000000e+00> : vector<48x128xf32>
    %8 = tpu.matmul %6, %7, %cst_7 {dimension_numbers = #tpu.dot_dimension_numbers<[1], [0], [0], [1], [0, 0, 1, 1], [], []>} : vector<48x128xbf16>, vector<128x128xbf16>, vector<48x128xf32> -> vector<48x128xf32>
    %c0_8 = arith.constant 0 : index
    %c0_9 = arith.constant 0 : index
    %9 = vector.load %arg5[%c0_8, %c0_9] : memref<1x128xf32, #tpu.memory_space<vmem>>, vector<1x128xf32>
    %10 = vector.broadcast %9 : vector<1x128xf32> to vector<48x128xf32>
    %11 = arith.addf %8, %10 : vector<48x128xf32>
    %12 = math.tanh %11 : vector<48x128xf32>
    %c0_10 = arith.constant 0 : index
    %c0_11 = arith.constant 0 : index
    %13 = vector.load %arg6[%c0_10, %c0_11] : memref<48x128xf32, #tpu.memory_space<vmem>>, vector<48x128xf32>
    tpu.vector_store %arg6[%c0_10, %c0_11], %12 {strides = array<i32>} : memref<48x128xf32, #tpu.memory_space<vmem>>, vector<48x128xf32>,
    return
  }
  func.func @transform_0(%arg0: i32) -> (i32, i32) {
    %c0_i32 = arith.constant 0 : i32
    %c0_i32_0 = arith.constant 0 : i32
    return %arg0, %c0_i32 : i32, i32
  }
  func.func @transform_1(%arg0: i32) -> (i32, i32) {
    %c0_i32 = arith.constant 0 : i32
    %c0_i32_0 = arith.constant 0 : i32
    %c0_i32_1 = arith.constant 0 : i32
    return %c0_i32, %c0_i32_0 : i32, i32
  }
  func.func @transform_2(%arg0: i32) -> (i32, i32) {
    %c0_i32 = arith.constant 0 : i32
    %c0_i32_0 = arith.constant 0 : i32
    %c0_i32_1 = arith.constant 0 : i32
    return %c0_i32, %c0_i32_0 : i32, i32
  }
  func.func @transform_3(%arg0: i32) -> (i32, i32) {
    %c0_i32 = arith.constant 0 : i32
    %c0_i32_0 = arith.constant 0 : i32
    %c0_i32_1 = arith.constant 0 : i32
    return %c0_i32, %c0_i32_0 : i32, i32
  }
  func.func @transform_4(%arg0: i32) -> (i32, i32) {
    %c0_i32 = arith.constant 0 : i32
    %c0_i32_0 = arith.constant 0 : i32
    %c0_i32_1 = arith.constant 0 : i32
    return %c0_i32, %c0_i32_0 : i32, i32
  }
  func.func @transform_5(%arg0: i32) -> (i32, i32) {
    %c0_i32 = arith.constant 0 : i32
    %c0_i32_0 = arith.constant 0 : i32
    return %arg0, %c0_i32 : i32, i32
  }
}

</mosaic_0001>

<bundles_post_ra>
// kernel: tpu_custom_call.1
= control target key start
LH: loop header
LB: loop body
LE: loop exit
PB: predicated region body
PF: predicated region fallthrough
CT: control target
= control target key end

     0   :  { %10 = vsyncpa [#allocation3], 0  ;;  %s748_s0 = inlined_call_operand.hbm [shape: bf16[48,128], index: 0, kind: input, shape index: {}]   ;;  %s749_s1 = inlined_call_operand.hbm [shape: bf16[128,128], index: 1, kind: input, shape index: {}]   ;;  %s750_s2 = inlined_call_operand.vmem [shape: f32[1,128], index: 2, kind: input, shape index: {}]   ;;  %s751_s3 = inlined_call_operand.hbm [shape: bf16[128,128], index: 3, kind: input, shape index: {}]   ;;  %s752_s4 = inlined_call_operand.vmem [shape: f32[1,128], index: 4, kind: input, shape index: {}]   ;;  %s753_s5 = inlined_call_operand.hbm [shape: f32[48,128], index: 5, kind: output, shape index: {}]  }
   0x1   :  { %11 = vsyncpa [#allocation6], 0 }
   0x2   :  { %12 = vsyncpa [#allocation4], 0  ;;  %s610_s18 = smov [#allocation5]   ;;  %s611_s20 = smov [#allocation2]  }
   0x3   :  { %s30_s19 = sshll.u32 %s610_s18, 4  ;;  %s18_s21 = sshll.u32 %s611_s20, 4  ;;  %s31_s19 = int_to_ptr.vmem [resolvable:$true] %s30_s19  ;;  %s650_s21 = int_to_ptr.vmem [resolvable:$true] %s18_s21 }
   0x4   :  { %s516_s24 = scalar_lea.hbm %s749_s1, 1024 }
   0x5   :  { %p517_p0 = scmp.ne.s32.totalorder %s749_s1, %s516_s24  ;;  %p520_p1 = scmp.lt.u32.totalorder %s516_s24, %s749_s1 }
   0x7   :  { %p522_p2 = pnand %p520_p1, %p517_p0 }
   0x9   :  { %525 = shalt.err (!%p522_p2)
}
   0xa   :  { %s526_s29 = scalar_lea.vmem %s31_s19, 1024  ;;  %p531_p4 = scmp.lt.s32.totalorder %s31_s19, %s31_s19 }
   0xb   :  { %p527_p3 = scmp.ne.s32.totalorder %s31_s19, %s526_s29  ;;  %p532_p5 = scmp.lt.s32.totalorder %s526_s29, %s526_s29 }
   0xd   :  { %p533_p6 = por %p532_p5, %p531_p4 }
   0xf   :  { %p534_p7 = pnand %p533_p6, %p527_p3 }
  0x11   :  { %537 = shalt.err (!%p534_p7)
}
  0x12   :  { %s612_s30 = smov 64   ;;  %s613_s6 = smov 4  }
  0x13   :  { %36 = dma.hbm_to_vmem [thread:$0]  %s749_s1, 1024, %s31_s19, [#allocation6], %s612_s30, %s612_s30, %s613_s6  }
  0x14   :  { %s538_s11 = scalar_lea.hbm %s748_s0, 384 }
  0x15   :  { %p539_p8 = scmp.ne.s32.totalorder %s748_s0, %s538_s11  ;;  %p542_p9 = scmp.lt.u32.totalorder %s538_s11, %s748_s0 }
  0x17   :  { %p544_p10 = pnand %p542_p9, %p539_p8 }
  0x19   :  { %547 = shalt.err (!%p544_p10)
}
  0x1a   :  { %s548_s16 = scalar_lea.vmem %s650_s21, 384  ;;  %p553_p12 = scmp.lt.s32.totalorder %s650_s21, %s650_s21 }
  0x1b   :  { %p549_p11 = scmp.ne.s32.totalorder %s650_s21, %s548_s16  ;;  %p554_p13 = scmp.lt.s32.totalorder %s548_s16, %s548_s16 }
  0x1d   :  { %p555_p0 = por %p554_p13, %p553_p12 }
  0x1f   :  { %p556_p1 = pnand %p555_p0, %p549_p11 }
  0x21   :  { %559 = shalt.err (!%p556_p1)
}
  0x22   :  { %24 = dma.hbm_to_vmem [thread:$0]  %s748_s0, 384, %s650_s21, [#allocation3], %s612_s30, %s612_s30, %s613_s6  }
  0x23   :  { %s614_s18 = smov [#allocation7]   ;;  %s560_s23 = scalar_lea.hbm %s751_s3, 1024 }
  0x24   :  { %s44_s19 = sshll.u32 %s614_s18, 4  ;;  %p561_p2 = scmp.ne.s32.totalorder %s751_s3, %s560_s23  ;;  %s45_s19 = int_to_ptr.vmem [resolvable:$true] %s44_s19 }
  0x25   :  { %p564_p3 = scmp.lt.u32.totalorder %s560_s23, %s751_s3 }
  0x27   :  { %p566_p4 = pnand %p564_p3, %p561_p2 }
  0x29   :  { %569 = shalt.err (!%p566_p4)
}
  0x2a   :  { %s570_s28 = scalar_lea.vmem %s45_s19, 1024  ;;  %p575_p6 = scmp.lt.s32.totalorder %s45_s19, %s45_s19 }
  0x2b   :  { %p571_p5 = scmp.ne.s32.totalorder %s45_s19, %s570_s28  ;;  %p576_p7 = scmp.lt.s32.totalorder %s570_s28, %s570_s28 }
  0x2d   :  { %p577_p8 = por %p576_p7, %p575_p6 }
  0x2f   :  { %p578_p9 = pnand %p577_p8, %p571_p5 }
  0x31   :  { %581 = shalt.err (!%p578_p9)
}
  0x32   :  { %50 = dma.hbm_to_vmem [thread:$0]  %s751_s3, 1024, %s45_s19, [#allocation6], %s612_s30, %s612_s30, %s613_s6  }
  0x33   :  { %604 = dma.done.wait [#allocation3], 384  }
  0x34   :  { %605 = vsyncadd [#allocation3], 4294966912 }
  0x35   :  { %606 = dma.done.wait [#allocation6], 2048  }
  0x36   :  { %607 = vsyncadd [#allocation6], 4294965248  ;;  %v615_v0 = vmov 0.0   ;;  %vm616_vm0 = vmmov 0   ;;  %v485_v1 = vld [vmem:[#allocation5] sm:$0xff]   ;;  %v486_v2 = vld [vmem:[#allocation5 + $0x8] sm:$0xff]  }
  0x37   :  { %419 = vmatprep.subr.bf16.mxu0 %v615_v0  ;;  %435 = vmatprep.mubr.msk.bf16.mxu0 %vm616_vm0, %v615_v0  ;;  %v487_v3 = vld [vmem:[#allocation5 + $0x10] sm:$0xff]   ;;  %v488_v4 = vld [vmem:[#allocation5 + $0x18] sm:$0xff]   ;;  %v496_v5 = vld [vmem:[#allocation7] sm:$0xff]  }
  0x38   :  { %447 = vmatprep.subr.bf16.mxu1 %v615_v0  ;;  %463 = vmatprep.mubr.msk.bf16.mxu1 %vm616_vm0, %v615_v0  ;;  %v497_v6 = vld [vmem:[#allocation7 + $0x8] sm:$0xff]   ;;  %v489_v7 = vld [vmem:[#allocation5 + $0x20] sm:$0xff]   ;;  %v498_v8 = vld [vmem:[#allocation7 + $0x10] sm:$0xff]  }
  0x39   :  { %420 = vmatpush3.bf16.msra.mxu0 %v485_v1  ;;  %448 = vmatpush3.bf16.msra.mxu1 %v496_v5  ;;  %v490_v9 = vld [vmem:[#allocation5 + $0x28] sm:$0xff]   ;;  %v499_v10 = vld [vmem:[#allocation7 + $0x18] sm:$0xff]   ;;  %v491_v11 = vld [vmem:[#allocation5 + $0x30] sm:$0xff]  }
  0x3a   :  { %421 = vmatprep.subr.bf16.mxu0 %v615_v0  ;;  %449 = vmatprep.subr.bf16.mxu1 %v615_v0  ;;  %v500_v12 = vld [vmem:[#allocation7 + $0x20] sm:$0xff]   ;;  %v492_v13 = vld [vmem:[#allocation5 + $0x38] sm:$0xff]   ;;  %v493_v14 = vld [vmem:[#allocation2] sm:$0xff]  }
  0x3b   :  { %v501_v15 = vld [vmem:[#allocation7 + $0x28] sm:$0xff]   ;;  %v494_v16 = vld [vmem:[#allocation2 + $0x8] sm:$0xff]   ;;  %v495_v17 = vld [vmem:[#allocation2 + $0x10] sm:$0xff]  }
  0x3c   :  { %v502_v18 = vld [vmem:[#allocation7 + $0x30] sm:$0xff]   ;;  %v503_v19 = vld [vmem:[#allocation7 + $0x38] sm:$0xff]   ;;  %v376_v20 = vld [vmem:[%s750_s2] ss:$0 sm:$0xff] }
  0x3d   :  { %422 = vmatpush3.bf16.msra.mxu0 %v486_v2  ;;  %450 = vmatpush3.bf16.msra.mxu1 %v497_v6  ;;  %v388_v42 = vld [vmem:[%s752_s4] ss:$0 sm:$0xff]  ;;  %s617_s4 = smov [#allocation8]  }
  0x3e   :  { %423 = vmatprep.subr.bf16.mxu0 %v615_v0  ;;  %451 = vmatprep.subr.bf16.mxu1 %v615_v0  ;;  %s363_s6 = sshll.u32 %s617_s4, 4  ;;  %s364_s6 = int_to_ptr.vmem [resolvable:$true] %s363_s6 }
  0x3f   :  { %s582_s7 = scalar_lea.vmem %s364_s6, 768  ;;  %p587_p11 = scmp.lt.s32.totalorder %s364_s6, %s364_s6 }
  0x40   :  { %p583_p10 = scmp.ne.s32.totalorder %s364_s6, %s582_s7  ;;  %p588_p12 = scmp.lt.s32.totalorder %s582_s7, %s582_s7 }
  0x41   :  { %424 = vmatpush3.bf16.msra.mxu0 %v487_v3  ;;  %452 = vmatpush3.bf16.msra.mxu1 %v498_v8 }
  0x42   :  { %425 = vmatprep.subr.bf16.mxu0 %v615_v0  ;;  %453 = vmatprep.subr.bf16.mxu1 %v615_v0  ;;  %p589_p13 = por %p588_p12, %p587_p11 }
  0x44   :  { %p590_p0 = pnand %p589_p13, %p583_p10 }
  0x45   :  { %426 = vmatpush3.bf16.msra.mxu0 %v488_v4  ;;  %454 = vmatpush3.bf16.msra.mxu1 %v499_v10 }
  0x46   :  { %427 = vmatprep.subr.bf16.mxu0 %v615_v0  ;;  %455 = vmatprep.subr.bf16.mxu1 %v615_v0 }
  0x49   :  { %428 = vmatpush3.bf16.msra.mxu0 %v489_v7  ;;  %456 = vmatpush3.bf16.msra.mxu1 %v500_v12 }
  0x4a   :  { %429 = vmatprep.subr.bf16.mxu0 %v615_v0  ;;  %457 = vmatprep.subr.bf16.mxu1 %v615_v0 }
  0x4d   :  { %430 = vmatpush3.bf16.msra.mxu0 %v490_v9  ;;  %458 = vmatpush3.bf16.msra.mxu1 %v501_v15 }
  0x4e   :  { %431 = vmatprep.subr.bf16.mxu0 %v615_v0  ;;  %459 = vmatprep.subr.bf16.mxu1 %v615_v0 }
  0x51   :  { %432 = vmatpush3.bf16.msra.mxu0 %v491_v11  ;;  %460 = vmatpush3.bf16.msra.mxu1 %v502_v18 }
  0x52   :  { %433 = vmatprep.subr.bf16.mxu0 %v615_v0  ;;  %461 = vmatprep.subr.bf16.mxu1 %v615_v0 }
  0x55   :  { %434 = vmatpush3.bf16.msra.mxu0 %v492_v13  ;;  %462 = vmatpush3.bf16.msra.mxu1 %v503_v19 }
  0x58   :  { %436 = vmatmul.mubr.bf16.vlgmr.msra.gmra.mrb[0].mxu0 %v493_v14 }
  0x59   :  { %439 = vmatprep.mubr.msk.bf16.mxu0 %vm616_vm0, %v615_v0 }
  0x60   :  { %440 = vmatmul.mubr.bf16.gmra.mrb[4].mxu0 %v494_v16 }
  0x61   :  { %443 = vmatprep.mubr.msk.bf16.mxu0 %vm616_vm0, %v615_v0 }
  0x68   :  { %444 = vmatmul.mubr.bf16.gmra.mrb[8].mxu0 %v495_v17 }
 0x12b   :  { %v192_v21 = vpop.f32.mrb[0].mxu0 }
 0x12c   :  { %v437_v22 = vpop.f32.mrb[1].mxu0  ;;  %v193_v24 = vadd.f32 %v376_v20, %v192_v21 }
 0x12d   :  { %v195_v23 = vpop.f32.mrb[2].mxu0 }
 0x12e   :  { %v196_v25 = vadd.f32 %v376_v20, %v195_v23  ;;  %v438_v26 = vpop.f32.mrb[3].mxu0 }
 0x130   :  { %v215_v27 = vpack.c.bf16 %v196_v25, %v193_v24 }
 0x132   :  { %464 = vmatmul.mubr.bf16.vlgmr.msra.gmra.mrb[0].mxu1 %v215_v27 }
 0x133   :  { %v200_v28 = vpop.f32.mrb[4].mxu0  ;;  %467 = vmatprep.mubr.msk.bf16.mxu1 %vm616_vm0, %v615_v0 }
 0x134   :  { %v441_v29 = vpop.f32.mrb[5].mxu0  ;;  %v201_v31 = vadd.f32 %v376_v20, %v200_v28 }
 0x135   :  { %v203_v30 = vpop.f32.mrb[6].mxu0 }
 0x136   :  { %v204_v32 = vadd.f32 %v376_v20, %v203_v30  ;;  %v442_v33 = vpop.f32.mrb[7].mxu0 }
 0x138   :  { %v216_v34 = vpack.c.bf16 %v204_v32, %v201_v31 }
 0x13a   :  { %468 = vmatmul.mubr.bf16.gmra.mrb[4].mxu1 %v216_v34 }
 0x13b   :  { %v208_v35 = vpop.f32.mrb[8].mxu0  ;;  %471 = vmatprep.mubr.msk.bf16.mxu1 %vm616_vm0, %v615_v0 }
 0x13c   :  { %v445_v36 = vpop.f32.mrb[9].mxu0  ;;  %v209_v38 = vadd.f32 %v376_v20, %v208_v35 }
 0x13d   :  { %v211_v37 = vpop.f32.mrb[10].mxu0 }
 0x13e   :  { %v212_v39 = vadd.f32 %v376_v20, %v211_v37  ;;  %v446_v40 = vpop.f32.mrb[11].mxu0 }
 0x140   :  { %v217_v41 = vpack.c.bf16 %v212_v39, %v209_v38 }
 0x142   :  { %472 = vmatmul.mubr.bf16.gmra.mrb[8].mxu1 %v217_v41 }
 0x205   :  { %v323_v43 = vpop.f32.mrb[0].mxu1 }
 0x206   :  { %v324_v44 = vadd.f32 %v388_v42, %v323_v43  ;;  %v465_v45 = vpop.f32.mrb[1].mxu1 }
 0x207   :  { %v326_v46 = vpop.f32.mrb[2].mxu1 }
 0x208   :  { %504 = vtanh.f32 %v324_v44  ;;  %v327_v47 = vadd.f32 %v388_v42, %v326_v46  ;;  %v466_v48 = vpop.f32.mrb[3].mxu1 }
 0x20a   :  { %506 = vtanh.f32 %v327_v47 }
 0x20d   :  { %v331_v49 = vpop.f32.mrb[4].mxu1 }
 0x20e   :  { %v332_v50 = vadd.f32 %v388_v42, %v331_v49  ;;  %v469_v51 = vpop.f32.mrb[5].mxu1 }
 0x20f   :  { %v334_v52 = vpop.f32.mrb[6].mxu1 }
 0x210   :  { %508 = vtanh.f32 %v332_v50  ;;  %v335_v53 = vadd.f32 %v388_v42, %v334_v52  ;;  %v470_v54 = vpop.f32.mrb[7].mxu1 }
 0x212   :  { %v505_v55 = vpop.eup %504  ;;  %510 = vtanh.f32 %v335_v53 }
 0x213   :  { %352 = vst [vmem:[#allocation8] sm:$0xff] %v505_v55 }
 0x214   :  { %v507_v56 = vpop.eup %506 }
 0x215   :  { %353 = vst [vmem:[#allocation8 + $0x8] sm:$0xff] %v507_v56  ;;  %v339_v57 = vpop.f32.mrb[8].mxu1 }
 0x216   :  { %v340_v58 = vadd.f32 %v388_v42, %v339_v57  ;;  %v473_v59 = vpop.f32.mrb[9].mxu1 }
 0x217   :  { %v342_v60 = vpop.f32.mrb[10].mxu1 }
 0x218   :  { %512 = vtanh.f32 %v340_v58  ;;  %v343_v61 = vadd.f32 %v388_v42, %v342_v60  ;;  %v474_v62 = vpop.f32.mrb[11].mxu1 }
 0x21a   :  { %v509_v63 = vpop.eup %508  ;;  %514 = vtanh.f32 %v343_v61 }
 0x21b   :  { %354 = vst [vmem:[#allocation8 + $0x10] sm:$0xff] %v509_v63 }
 0x21c   :  { %v511_v0 = vpop.eup %510 }
 0x21d   :  { %355 = vst [vmem:[#allocation8 + $0x18] sm:$0xff] %v511_v0 }
 0x222   :  { %v513_v1 = vpop.eup %512 }
 0x223   :  { %356 = vst [vmem:[#allocation8 + $0x20] sm:$0xff] %v513_v1 }
 0x224   :  { %v515_v2 = vpop.eup %514 }
 0x225   :  { %357 = vst [vmem:[#allocation8 + $0x28] sm:$0xff] %v515_v2 }
 0x226   :  { %593 = shalt.err (!%p590_p0)
}
 0x227   :  { %s594_s10 = scalar_lea.hbm %s753_s5, 768 }
 0x228   :  { %p595_p1 = scmp.ne.s32.totalorder %s753_s5, %s594_s10  ;;  %p598_p2 = scmp.lt.u32.totalorder %s594_s10, %s753_s5 }
 0x22a   :  { %p600_p3 = pnand %p598_p2, %p595_p1 }
 0x22c   :  { %603 = shalt.err (!%p600_p3)
}
 0x22d   :  { %s618_s15 = smov 128   ;;  %s619_s16 = smov 8  }
 0x22e   :  { %369 = dma.vmem_to_hbm [thread:$0]  %s364_s6, 768, %s753_s5, [#allocation4], %s618_s15, %s618_s15, %s619_s16  }
 0x22f   :  { %608 = dma.done.wait [#allocation4], 768  }
 0x230   :  { %609 = vsyncadd [#allocation4], 4294966528 }
 0x231   :  { %373 = vsyncpa [#allocation3], 1 }
 0x232   :  { %374 = vsyncpa [#allocation6], 1 }
 0x233   :  { %375 = vsyncpa [#allocation4], 1 }

</bundles_post_ra>
